<compile_context>
chip_gen: v7x
topology: tpu7x:2x2x1
jax: 0.10.0
libtpu: 0.0.40
codegen_flags: <defaults>
</compile_context>

<pallas_src>
import functools
import math

import jax
import jax.numpy as jnp
from jax.experimental import pallas as pl
from jax.experimental.pallas import tpu as pltpu


def _round_up(v, m):
    return (v + m - 1) // m * m


def _elementwise_dtype():
    """bf16 elementwise/mish on chips with a bf16 VPU/EUP (v6e/v7x), f32 otherwise."""
    try:
        kind = jax.devices()[0].device_kind.lower()
    except Exception:
        return jnp.float32
    if any(v in kind for v in ("v2", "v3", "v4", "v5")):
        return jnp.float32
    return jnp.bfloat16


def _mish(x, dtype):
    # mish(x) = x * tanh(softplus(x)) = x * n / (n + 2),  n = e^x (e^x + 2).
    # One EUP exp + one EUP approx reciprocal; Newton refinement dropped per review
    # (~1e-3 rel error, well under the bf16 weight-quantization tolerance).
    x = x.astype(dtype)
    e = jnp.exp(jnp.minimum(x, 20.0))          # clamp: for x > 20, tanh(softplus(x)) == 1
    n = e * (e + 2.0)
    d = n + 2.0
    # reciprocal kept on the f32 EUP path for portable lowering; casts are no-ops when
    # dtype is f32 and cheap relative to the halved bf16 exp/mul work on v6e/v7x.
    r = pl.reciprocal(d.astype(jnp.float32), approx=True).astype(dtype)
    return jnp.where(x > 20.0, x, x * n * r)


def noise_mlp_kernel(
    time_ref, xs_ref, freqs_ref,
    w1s_ref, w1c_ref, b1_ref, w2_ref, b2_ref,
    wm1xs_ref, wm1t_ref, bm1_ref,
    wm2_ref, bm2_ref, wm3_ref, bm3_ref,
    wf_ref, bf_ref,
    out_ref,
    *, compute_dtype,
):
    f32 = jnp.float32
    bf16 = jnp.bfloat16

    # ---- SinusoidalPosEmb (f32 for phase accuracy) ----
    t = time_ref[...]                       # (TB, 1)
    phase = t * freqs_ref[...]              # (TB, 1) * (1, half) -> (TB, half)
    sin_e = jnp.sin(phase)
    cos_e = jnp.cos(phase)

    # ---- time_mlp: Linear(t_dim, 2*t_dim) -> Mish -> Linear(2*t_dim, t_dim) ----
    # concat([sin, cos]) @ W1 == sin@W1_sin + cos@W1_cos  (tiny, kept in f32)
    h = (jnp.dot(sin_e, w1s_ref[...], preferred_element_type=f32)
         + jnp.dot(cos_e, w1c_ref[...], preferred_element_type=f32)
         + b1_ref[...])
    h = _mish(h, f32)
    t_emb = jnp.dot(h, w2_ref[...], preferred_element_type=f32) + b2_ref[...]

    # ---- mid_layer: Linear(in,256) -> Mish -> Linear(256,256) -> Mish -> Linear(256,256) -> Mish
    # concat([x, t_emb, state]) @ Wm1 == [x||state]@Wm1_xs + t_emb@Wm1_t  (row-reordered split)
    # bf16 weights and bf16 dot inputs, f32 MXU accumulation; elementwise math in
    # compute_dtype (bf16 on v6e/v7x, f32 on v5e).
    m = (jnp.dot(xs_ref[...].astype(bf16), wm1xs_ref[...], preferred_element_type=f32)
         + jnp.dot(t_emb.astype(bf16), wm1t_ref[...], preferred_element_type=f32)
         + bm1_ref[...])
    m = _mish(m, compute_dtype)
    m = _mish(jnp.dot(m.astype(bf16), wm2_ref[...], preferred_element_type=f32) + bm2_ref[...],
              compute_dtype)
    m = _mish(jnp.dot(m.astype(bf16), wm3_ref[...], preferred_element_type=f32) + bm3_ref[...],
              compute_dtype)

    # ---- final_layer: Linear(256, action_dim), zero-padded to 128 lanes ----
    # Output last dim is 128 -> unmasked lane-dense stores (no vst.msk).
    out = jnp.dot(m.astype(bf16), wf_ref[...], preferred_element_type=f32) + bf_ref[...]
    out_ref[...] = out.astype(out_ref.dtype)


def prepare_params(params, action_dim, lane_pad=128):
    """One-time conversion: bf16 wide weights, merged [x||state] first-layer weight,
    and the final layer zero-padded to a lane-dense 128-wide output."""
    bf16 = jnp.bfloat16
    n_out = _round_up(max(action_dim, 1), lane_pad)
    wf = params["wf"].astype(bf16)
    bf_ = params["bf"]
    if wf.shape[1] < n_out:
        wf = jnp.pad(wf, ((0, 0), (0, n_out - wf.shape[1])))
        bf_ = jnp.pad(bf_, ((0, 0), (0, n_out - bf_.shape[1])))
    return {
        "freqs": params["freqs"],
        "w1_sin": params["w1_sin"], "w1_cos": params["w1_cos"], "b1": params["b1"],
        "w2": params["w2"], "b2": params["b2"],
        "wm1_xs": jnp.concatenate([params["wm1_x"], params["wm1_s"]], axis=0).astype(bf16),
        "wm1_t": params["wm1_t"].astype(bf16),
        "bm1": params["bm1"],
        "wm2": params["wm2"].astype(bf16), "bm2": params["bm2"],
        "wm3": params["wm3"].astype(bf16), "bm3": params["bm3"],
        "wf": wf, "bf": bf_,
        "n_out": n_out,
    }


def noise_mlp_forward(x, time, state, prepped):
    """x: (B, action_dim), time: (B,) or (B,1), state: (B, state_dim)."""
    if time.ndim > 1:
        time = jnp.squeeze(time, axis=1)
    B, action_dim = x.shape
    n_out = prepped["n_out"]

    # Pre-concatenate x||state so the first mid-layer needs only 2 partial matmuls.
    xs = jnp.concatenate([x, state], axis=1).astype(jnp.float32)
    time_col = time.reshape(B, 1).astype(jnp.float32)

    # Batch tile: multiple of 8 (sublane), large cap (2048) to amortize per-step
    # overhead; sized to ceil(B/2) so big batches produce >= 2 grid steps and the
    # "parallel" axis can shard across both TensorCores on multi-TC chips.
    TB = min(2048, _round_up(max((B + 1) // 2, 1), 8))
    pB = _round_up(B, TB)
    if pB != B:
        pad = pB - B
        xs = jnp.pad(xs, ((0, pad), (0, 0)))
        time_col = jnp.pad(time_col, ((0, pad), (0, 0)))
    grid = (pB // TB,)

    compute_dtype = _elementwise_dtype()

    inputs = (
        time_col, xs, prepped["freqs"],
        prepped["w1_sin"], prepped["w1_cos"], prepped["b1"],
        prepped["w2"], prepped["b2"],
        prepped["wm1_xs"], prepped["wm1_t"], prepped["bm1"],
        prepped["wm2"], prepped["bm2"], prepped["wm3"], prepped["bm3"],
        prepped["wf"], prepped["bf"],
    )

    def act_spec(d):
        # batch-tiled activation / output block
        return pl.BlockSpec((TB, d), lambda i: (i, 0))

    def resident_spec(a):
        # whole-array block with constant index -> stays resident in VMEM across steps
        return pl.BlockSpec(a.shape, lambda i: (0, 0))

    in_specs = [act_spec(1), act_spec(xs.shape[1])] + [resident_spec(a) for a in inputs[2:]]

    # Advisory cost estimate for XLA scheduling around the custom call.
    d_in = xs.shape[1]
    flops = 2 * pB * (2 * 8 * 32 + 32 * 16 + d_in * 256 + 16 * 256
                      + 2 * 256 * 256 + 256 * n_out)
    transcendentals = pB * (16 + 2 * (32 + 3 * 256))     # sin/cos + mish exp & recip
    bytes_accessed = sum(int(a.size) * a.dtype.itemsize for a in inputs) + pB * n_out * 4
    cost = pl.CostEstimate(flops=flops, transcendentals=transcendentals,
                           bytes_accessed=bytes_accessed)

    # Raise the scoped-VMEM limit only when tiles are large (several (TB,256) f32
    # intermediates); 48 MiB is safe on v5e/v6e (128 MiB) and v7x (64 MiB/TC).
    vmem_limit = (48 * 1024 * 1024) if TB > 512 else None

    out = pl.pallas_call(
        functools.partial(noise_mlp_kernel, compute_dtype=compute_dtype),
        out_shape=jax.ShapeDtypeStruct((pB, n_out), jnp.float32),
        grid=grid,
        in_specs=in_specs,
        out_specs=act_spec(n_out),
        compiler_params=pltpu.CompilerParams(
            dimension_semantics=("parallel",),
            vmem_limit_bytes=vmem_limit),
        cost_estimate=cost,
    )(*inputs)
    return out[:B, :action_dim]


def init_params(key, state_dim, action_dim, t_dim=16):
    """Deterministic init mimicking torch.nn.Linear (uniform +-1/sqrt(fan_in)).

    All weights stored as (in, out) in f32 so the kernel does x @ W + b.
    """
    half = t_dim // 2
    emb_scale = math.log(10000.0) / (half - 1)
    freqs = jnp.exp(jnp.arange(half, dtype=jnp.float32) * -emb_scale).reshape(1, half)

    def linear(key, fan_in, fan_out):
        kw, kb = jax.random.split(key)
        bound = 1.0 / math.sqrt(fan_in)
        w = jax.random.uniform(kw, (fan_in, fan_out), jnp.float32, -bound, bound)
        b = jax.random.uniform(kb, (1, fan_out), jnp.float32, -bound, bound)
        return w, b

    keys = jax.random.split(key, 6)
    input_dim = state_dim + action_dim + t_dim

    w1, b1 = linear(keys[0], t_dim, t_dim * 2)        # time_mlp Linear(16, 32)
    w2, b2 = linear(keys[1], t_dim * 2, t_dim)        # time_mlp Linear(32, 16)
    wm1, bm1 = linear(keys[2], input_dim, 256)        # mid Linear(input_dim, 256)
    wm2, bm2 = linear(keys[3], 256, 256)
    wm3, bm3 = linear(keys[4], 256, 256)
    wf, bf = linear(keys[5], 256, action_dim)         # final Linear(256, action_dim)

    return {
        "freqs": freqs,
        # split the first time_mlp weight along its input (sin||cos) axis
        "w1_sin": w1[:half, :], "w1_cos": w1[half:, :], "b1": b1,
        "w2": w2, "b2": b2,
        # split the first mid_layer weight along its input (x||t||state) axis
        "wm1_x": wm1[:action_dim, :],
        "wm1_t": wm1[action_dim:action_dim + t_dim, :],
        "wm1_s": wm1[action_dim + t_dim:, :],
        "bm1": bm1,
        "wm2": wm2, "bm2": bm2,
        "wm3": wm3, "bm3": bm3,
        "wf": wf, "bf": bf,
    }


def noise_mlp_reference(x, time, state, params, t_dim=16):
    """Pure-JAX f32 reference matching the PyTorch forward exactly."""
    if time.ndim > 1:
        time = jnp.squeeze(time, axis=1)
    phase = time[:, None] * params["freqs"]           # (B, half)
    emb = jnp.concatenate([jnp.sin(phase), jnp.cos(phase)], axis=-1)

    def mish(v):
        return v * jnp.tanh(jax.nn.softplus(v))

    w1 = jnp.concatenate([params["w1_sin"], params["w1_cos"]], axis=0)
    t = mish(emb @ w1 + params["b1"]) @ params["w2"] + params["b2"]

    cat = jnp.concatenate([x, t, state], axis=1)
    wm1 = jnp.concatenate([params["wm1_x"], params["wm1_t"], params["wm1_s"]], axis=0)
    m = mish(cat @ wm1 + params["bm1"])
    m = mish(m @ params["wm2"] + params["bm2"])
    m = mish(m @ params["wm3"] + params["bm3"])
    return m @ params["wf"] + params["bf"]


if __name__ == "__main__":
    B, state_dim, action_dim, t_dim = 2, 6, 4, 16

    key = jax.random.PRNGKey(0)
    k_params, k_x, k_t, k_s = jax.random.split(key, 4)

    params = init_params(k_params, state_dim, action_dim, t_dim)
    prepped = prepare_params(params, action_dim)       # one-time bf16 cast / padding

    x = jax.random.normal(k_x, (B, action_dim), jnp.float32)        # noisy action
    time = jax.random.uniform(k_t, (B,), jnp.float32, 0.0, 100.0)   # diffusion timestep
    state = jax.random.normal(k_s, (B, state_dim), jnp.float32)

    out = noise_mlp_forward(x, time, state, prepped)
    out = jax.block_until_ready(out)

    ref = noise_mlp_reference(x, time, state, params, t_dim)
    assert out.shape == (B, action_dim)
    # bf16 weights + bf16 dot inputs (+ bf16 elementwise mish on v6e/v7x, approx
    # reciprocal without Newton step) -> compare at loose tolerance.
    assert jnp.allclose(out, ref, atol=1e-1, rtol=1e-1), (out, ref)

    print("KERNEL_OK")
</pallas_src>

<mosaic_0001>
module attributes {stable_mosaic.version = 11 : i64} {
  func.func @noise_mlp_kernel(%arg0: i32, %arg1: memref<8x1xf32, #tpu.memory_space<vmem>>, %arg2: memref<8x10xf32, #tpu.memory_space<vmem>>, %arg3: memref<1x8xf32, #tpu.memory_space<vmem>>, %arg4: memref<8x32xf32, #tpu.memory_space<vmem>>, %arg5: memref<8x32xf32, #tpu.memory_space<vmem>>, %arg6: memref<1x32xf32, #tpu.memory_space<vmem>>, %arg7: memref<32x16xf32, #tpu.memory_space<vmem>>, %arg8: memref<1x16xf32, #tpu.memory_space<vmem>>, %arg9: memref<10x256xbf16, #tpu.memory_space<vmem>>, %arg10: memref<16x256xbf16, #tpu.memory_space<vmem>>, %arg11: memref<1x256xf32, #tpu.memory_space<vmem>>, %arg12: memref<256x256xbf16, #tpu.memory_space<vmem>>, %arg13: memref<1x256xf32, #tpu.memory_space<vmem>>, %arg14: memref<256x256xbf16, #tpu.memory_space<vmem>>, %arg15: memref<1x256xf32, #tpu.memory_space<vmem>>, %arg16: memref<256x128xbf16, #tpu.memory_space<vmem>>, %arg17: memref<1x128xf32, #tpu.memory_space<vmem>>, %arg18: memref<8x128xf32, #tpu.memory_space<vmem>>) attributes {dimension_semantics = [#tpu.dimension_semantics<parallel>], iteration_bounds = array<i64: 1>, scalar_prefetch = 0 : i64, scratch_operands = 0 : i64, tpu.core_type = #tpu.core_type<tc>, window_params = [{transform_indices = @transform_0, window_bounds = array<i64: 8, 1>}, {transform_indices = @transform_1, window_bounds = array<i64: 8, 10>}, {pipeline_mode = #tpu.pipeline_mode<synchronous>, transform_indices = @transform_2, window_bounds = array<i64: 1, 8>}, {pipeline_mode = #tpu.pipeline_mode<synchronous>, transform_indices = @transform_3, window_bounds = array<i64: 8, 32>}, {pipeline_mode = #tpu.pipeline_mode<synchronous>, transform_indices = @transform_4, window_bounds = array<i64: 8, 32>}, {pipeline_mode = #tpu.pipeline_mode<synchronous>, transform_indices = @transform_5, window_bounds = array<i64: 1, 32>}, {pipeline_mode = #tpu.pipeline_mode<synchronous>, transform_indices = @transform_6, window_bounds = array<i64: 32, 16>}, {pipeline_mode = #tpu.pipeline_mode<synchronous>, transform_indices = @transform_7, window_bounds = array<i64: 1, 16>}, {pipeline_mode = #tpu.pipeline_mode<synchronous>, transform_indices = @transform_8, window_bounds = array<i64: 10, 256>}, {pipeline_mode = #tpu.pipeline_mode<synchronous>, transform_indices = @transform_9, window_bounds = array<i64: 16, 256>}, {pipeline_mode = #tpu.pipeline_mode<synchronous>, transform_indices = @transform_10, window_bounds = array<i64: 1, 256>}, {pipeline_mode = #tpu.pipeline_mode<synchronous>, transform_indices = @transform_11, window_bounds = array<i64: 256, 256>}, {pipeline_mode = #tpu.pipeline_mode<synchronous>, transform_indices = @transform_12, window_bounds = array<i64: 1, 256>}, {pipeline_mode = #tpu.pipeline_mode<synchronous>, transform_indices = @transform_13, window_bounds = array<i64: 256, 256>}, {pipeline_mode = #tpu.pipeline_mode<synchronous>, transform_indices = @transform_14, window_bounds = array<i64: 1, 256>}, {pipeline_mode = #tpu.pipeline_mode<synchronous>, transform_indices = @transform_15, window_bounds = array<i64: 256, 128>}, {pipeline_mode = #tpu.pipeline_mode<synchronous>, transform_indices = @transform_16, window_bounds = array<i64: 1, 128>}, {transform_indices = @transform_17, window_bounds = array<i64: 8, 128>}]} {
    %c0 = arith.constant 0 : index
    %c0_0 = arith.constant 0 : index
    %0 = vector.load %arg1[%c0, %c0_0] : memref<8x1xf32, #tpu.memory_space<vmem>>, vector<8x1xf32>
    %c0_1 = arith.constant 0 : index
    %c0_2 = arith.constant 0 : index
    %1 = vector.load %arg3[%c0_1, %c0_2] : memref<1x8xf32, #tpu.memory_space<vmem>>, vector<1x8xf32>
    %2 = vector.broadcast %0 : vector<8x1xf32> to vector<8x8xf32>
    %3 = vector.broadcast %1 : vector<1x8xf32> to vector<8x8xf32>
    %4 = arith.mulf %2, %3 : vector<8x8xf32>
    %5 = math.sin %4 : vector<8x8xf32>
    %6 = math.cos %4 : vector<8x8xf32>
    %c0_3 = arith.constant 0 : index
    %c0_4 = arith.constant 0 : index
    %7 = vector.load %arg4[%c0_3, %c0_4] : memref<8x32xf32, #tpu.memory_space<vmem>>, vector<8x32xf32>
    %cst = arith.constant dense<0.000000e+00> : vector<8x32xf32>
    %8 = tpu.matmul %5, %7, %cst {dimension_numbers = #tpu.dot_dimension_numbers<[1], [0], [0], [1], [0, 0, 1, 1], [], []>} : vector<8x8xf32>, vector<8x32xf32>, vector<8x32xf32> -> vector<8x32xf32>
    %c0_5 = arith.constant 0 : index
    %c0_6 = arith.constant 0 : index
    %9 = vector.load %arg5[%c0_5, %c0_6] : memref<8x32xf32, #tpu.memory_space<vmem>>, vector<8x32xf32>
    %cst_7 = arith.constant dense<0.000000e+00> : vector<8x32xf32>
    %10 = tpu.matmul %6, %9, %cst_7 {dimension_numbers = #tpu.dot_dimension_numbers<[1], [0], [0], [1], [0, 0, 1, 1], [], []>} : vector<8x8xf32>, vector<8x32xf32>, vector<8x32xf32> -> vector<8x32xf32>
    %11 = arith.addf %8, %10 : vector<8x32xf32>
    %c0_8 = arith.constant 0 : index
    %c0_9 = arith.constant 0 : index
    %12 = vector.load %arg6[%c0_8, %c0_9] : memref<1x32xf32, #tpu.memory_space<vmem>>, vector<1x32xf32>
    %13 = vector.broadcast %12 : vector<1x32xf32> to vector<8x32xf32>
    %14 = arith.addf %11, %13 : vector<8x32xf32>
    %cst_10 = arith.constant 2.000000e+01 : f32
    %15 = vector.broadcast %cst_10 : f32 to vector<8x32xf32>
    %16 = arith.minimumf %14, %15 : vector<8x32xf32>
    %17 = math.exp %16 : vector<8x32xf32>
    %cst_11 = arith.constant 2.000000e+00 : f32
    %18 = vector.broadcast %cst_11 : f32 to vector<8x32xf32>
    %19 = arith.addf %17, %18 : vector<8x32xf32>
    %20 = arith.mulf %17, %19 : vector<8x32xf32>
    %cst_12 = arith.constant 2.000000e+00 : f32
    %21 = vector.broadcast %cst_12 : f32 to vector<8x32xf32>
    %22 = arith.addf %20, %21 : vector<8x32xf32>
    %23 = tpu.reciprocal %22 {approx = true} : vector<8x32xf32> -> vector<8x32xf32>
    %cst_13 = arith.constant 2.000000e+01 : f32
    %24 = vector.broadcast %cst_13 : f32 to vector<8x32xf32>
    %25 = arith.cmpf ogt, %14, %24 : vector<8x32xf32>
    %26 = arith.mulf %14, %20 : vector<8x32xf32>
    %27 = arith.mulf %26, %23 : vector<8x32xf32>
    %28 = arith.select %25, %14, %27 : vector<8x32xi1>, vector<8x32xf32>
    %c0_14 = arith.constant 0 : index
    %c0_15 = arith.constant 0 : index
    %29 = vector.load %arg7[%c0_14, %c0_15] : memref<32x16xf32, #tpu.memory_space<vmem>>, vector<32x16xf32>
    %cst_16 = arith.constant dense<0.000000e+00> : vector<8x16xf32>
    %30 = tpu.matmul %28, %29, %cst_16 {dimension_numbers = #tpu.dot_dimension_numbers<[1], [0], [0], [1], [0, 0, 1, 1], [], []>} : vector<8x32xf32>, vector<32x16xf32>, vector<8x16xf32> -> vector<8x16xf32>
    %c0_17 = arith.constant 0 : index
    %c0_18 = arith.constant 0 : index
    %31 = vector.load %arg8[%c0_17, %c0_18] : memref<1x16xf32, #tpu.memory_space<vmem>>, vector<1x16xf32>
    %32 = vector.broadcast %31 : vector<1x16xf32> to vector<8x16xf32>
    %33 = arith.addf %30, %32 : vector<8x16xf32>
    %c0_19 = arith.constant 0 : index
    %c0_20 = arith.constant 0 : index
    %34 = vector.load %arg2[%c0_19, %c0_20] : memref<8x10xf32, #tpu.memory_space<vmem>>, vector<8x10xf32>
    %35 = arith.truncf %34 : vector<8x10xf32> to vector<8x10xbf16>
    %c0_21 = arith.constant 0 : index
    %c0_22 = arith.constant 0 : index
    %36 = vector.load %arg9[%c0_21, %c0_22] : memref<10x256xbf16, #tpu.memory_space<vmem>>, vector<10x256xbf16>
    %cst_23 = arith.constant dense<0.000000e+00> : vector<8x256xf32>
    %37 = tpu.matmul %35, %36, %cst_23 {dimension_numbers = #tpu.dot_dimension_numbers<[1], [0], [0], [1], [0, 0, 1, 1], [], []>} : vector<8x10xbf16>, vector<10x256xbf16>, vector<8x256xf32> -> vector<8x256xf32>
    %38 = arith.truncf %33 : vector<8x16xf32> to vector<8x16xbf16>
    %c0_24 = arith.constant 0 : index
    %c0_25 = arith.constant 0 : index
    %39 = vector.load %arg10[%c0_24, %c0_25] : memref<16x256xbf16, #tpu.memory_space<vmem>>, vector<16x256xbf16>
    %cst_26 = arith.constant dense<0.000000e+00> : vector<8x256xf32>
    %40 = tpu.matmul %38, %39, %cst_26 {dimension_numbers = #tpu.dot_dimension_numbers<[1], [0], [0], [1], [0, 0, 1, 1], [], []>} : vector<8x16xbf16>, vector<16x256xbf16>, vector<8x256xf32> -> vector<8x256xf32>
    %41 = arith.addf %37, %40 : vector<8x256xf32>
    %c0_27 = arith.constant 0 : index
    %c0_28 = arith.constant 0 : index
    %42 = vector.load %arg11[%c0_27, %c0_28] : memref<1x256xf32, #tpu.memory_space<vmem>>, vector<1x256xf32>
    %43 = vector.broadcast %42 : vector<1x256xf32> to vector<8x256xf32>
    %44 = arith.addf %41, %43 : vector<8x256xf32>
    %45 = arith.truncf %44 : vector<8x256xf32> to vector<8x256xbf16>
    %cst_29 = arith.constant 2.000000e+01 : bf16
    %46 = vector.broadcast %cst_29 : bf16 to vector<8x256xbf16>
    %47 = arith.minimumf %45, %46 : vector<8x256xbf16>
    %48 = math.exp %47 : vector<8x256xbf16>
    %cst_30 = arith.constant 2.000000e+00 : bf16
    %49 = vector.broadcast %cst_30 : bf16 to vector<8x256xbf16>
    %50 = arith.addf %48, %49 : vector<8x256xbf16>
    %51 = arith.mulf %48, %50 : vector<8x256xbf16>
    %cst_31 = arith.constant 2.000000e+00 : bf16
    %52 = vector.broadcast %cst_31 : bf16 to vector<8x256xbf16>
    %53 = arith.addf %51, %52 : vector<8x256xbf16>
    %54 = arith.extf %53 : vector<8x256xbf16> to vector<8x256xf32>
    %55 = tpu.reciprocal %54 {approx = true} : vector<8x256xf32> -> vector<8x256xf32>
    %56 = arith.truncf %55 : vector<8x256xf32> to vector<8x256xbf16>
    %cst_32 = arith.constant 2.000000e+01 : bf16
    %57 = vector.broadcast %cst_32 : bf16 to vector<8x256xbf16>
    %58 = arith.cmpf ogt, %45, %57 : vector<8x256xbf16>
    %59 = arith.mulf %45, %51 : vector<8x256xbf16>
    %60 = arith.mulf %59, %56 : vector<8x256xbf16>
    %61 = arith.select %58, %45, %60 : vector<8x256xi1>, vector<8x256xbf16>
    %c0_33 = arith.constant 0 : index
    %c0_34 = arith.constant 0 : index
    %62 = vector.load %arg12[%c0_33, %c0_34] : memref<256x256xbf16, #tpu.memory_space<vmem>>, vector<256x256xbf16>
    %cst_35 = arith.constant dense<0.000000e+00> : vector<8x256xf32>
    %63 = tpu.matmul %61, %62, %cst_35 {dimension_numbers = #tpu.dot_dimension_numbers<[1], [0], [0], [1], [0, 0, 1, 1], [], []>} : vector<8x256xbf16>, vector<256x256xbf16>, vector<8x256xf32> -> vector<8x256xf32>
    %c0_36 = arith.constant 0 : index
    %c0_37 = arith.constant 0 : index
    %64 = vector.load %arg13[%c0_36, %c0_37] : memref<1x256xf32, #tpu.memory_space<vmem>>, vector<1x256xf32>
    %65 = vector.broadcast %64 : vector<1x256xf32> to vector<8x256xf32>
    %66 = arith.addf %63, %65 : vector<8x256xf32>
    %67 = arith.truncf %66 : vector<8x256xf32> to vector<8x256xbf16>
    %cst_38 = arith.constant 2.000000e+01 : bf16
    %68 = vector.broadcast %cst_38 : bf16 to vector<8x256xbf16>
    %69 = arith.minimumf %67, %68 : vector<8x256xbf16>
    %70 = math.exp %69 : vector<8x256xbf16>
    %cst_39 = arith.constant 2.000000e+00 : bf16
    %71 = vector.broadcast %cst_39 : bf16 to vector<8x256xbf16>
    %72 = arith.addf %70, %71 : vector<8x256xbf16>
    %73 = arith.mulf %70, %72 : vector<8x256xbf16>
    %cst_40 = arith.constant 2.000000e+00 : bf16
    %74 = vector.broadcast %cst_40 : bf16 to vector<8x256xbf16>
    %75 = arith.addf %73, %74 : vector<8x256xbf16>
    %76 = arith.extf %75 : vector<8x256xbf16> to vector<8x256xf32>
    %77 = tpu.reciprocal %76 {approx = true} : vector<8x256xf32> -> vector<8x256xf32>
    %78 = arith.truncf %77 : vector<8x256xf32> to vector<8x256xbf16>
    %cst_41 = arith.constant 2.000000e+01 : bf16
    %79 = vector.broadcast %cst_41 : bf16 to vector<8x256xbf16>
    %80 = arith.cmpf ogt, %67, %79 : vector<8x256xbf16>
    %81 = arith.mulf %67, %73 : vector<8x256xbf16>
    %82 = arith.mulf %81, %78 : vector<8x256xbf16>
    %83 = arith.select %80, %67, %82 : vector<8x256xi1>, vector<8x256xbf16>
    %c0_42 = arith.constant 0 : index
    %c0_43 = arith.constant 0 : index
    %84 = vector.load %arg14[%c0_42, %c0_43] : memref<256x256xbf16, #tpu.memory_space<vmem>>, vector<256x256xbf16>
    %cst_44 = arith.constant dense<0.000000e+00> : vector<8x256xf32>
    %85 = tpu.matmul %83, %84, %cst_44 {dimension_numbers = #tpu.dot_dimension_numbers<[1], [0], [0], [1], [0, 0, 1, 1], [], []>} : vector<8x256xbf16>, vector<256x256xbf16>, vector<8x256xf32> -> vector<8x256xf32>
    %c0_45 = arith.constant 0 : index
    %c0_46 = arith.constant 0 : index
    %86 = vector.load %arg15[%c0_45, %c0_46] : memref<1x256xf32, #tpu.memory_space<vmem>>, vector<1x256xf32>
    %87 = vector.broadcast %86 : vector<1x256xf32> to vector<8x256xf32>
    %88 = arith.addf %85, %87 : vector<8x256xf32>
    %89 = arith.truncf %88 : vector<8x256xf32> to vector<8x256xbf16>
    %cst_47 = arith.constant 2.000000e+01 : bf16
    %90 = vector.broadcast %cst_47 : bf16 to vector<8x256xbf16>
    %91 = arith.minimumf %89, %90 : vector<8x256xbf16>
    %92 = math.exp %91 : vector<8x256xbf16>
    %cst_48 = arith.constant 2.000000e+00 : bf16
    %93 = vector.broadcast %cst_48 : bf16 to vector<8x256xbf16>
    %94 = arith.addf %92, %93 : vector<8x256xbf16>
    %95 = arith.mulf %92, %94 : vector<8x256xbf16>
    %cst_49 = arith.constant 2.000000e+00 : bf16
    %96 = vector.broadcast %cst_49 : bf16 to vector<8x256xbf16>
    %97 = arith.addf %95, %96 : vector<8x256xbf16>
    %98 = arith.extf %97 : vector<8x256xbf16> to vector<8x256xf32>
    %99 = tpu.reciprocal %98 {approx = true} : vector<8x256xf32> -> vector<8x256xf32>
    %100 = arith.truncf %99 : vector<8x256xf32> to vector<8x256xbf16>
    %cst_50 = arith.constant 2.000000e+01 : bf16
    %101 = vector.broadcast %cst_50 : bf16 to vector<8x256xbf16>
    %102 = arith.cmpf ogt, %89, %101 : vector<8x256xbf16>
    %103 = arith.mulf %89, %95 : vector<8x256xbf16>
    %104 = arith.mulf %103, %100 : vector<8x256xbf16>
    %105 = arith.select %102, %89, %104 : vector<8x256xi1>, vector<8x256xbf16>
    %c0_51 = arith.constant 0 : index
    %c0_52 = arith.constant 0 : index
    %106 = vector.load %arg16[%c0_51, %c0_52] : memref<256x128xbf16, #tpu.memory_space<vmem>>, vector<256x128xbf16>
    %cst_53 = arith.constant dense<0.000000e+00> : vector<8x128xf32>
    %107 = tpu.matmul %105, %106, %cst_53 {dimension_numbers = #tpu.dot_dimension_numbers<[1], [0], [0], [1], [0, 0, 1, 1], [], []>} : vector<8x256xbf16>, vector<256x128xbf16>, vector<8x128xf32> -> vector<8x128xf32>
    %c0_54 = arith.constant 0 : index
    %c0_55 = arith.constant 0 : index
    %108 = vector.load %arg17[%c0_54, %c0_55] : memref<1x128xf32, #tpu.memory_space<vmem>>, vector<1x128xf32>
    %109 = vector.broadcast %108 : vector<1x128xf32> to vector<8x128xf32>
    %110 = arith.addf %107, %109 : vector<8x128xf32>
    %c0_56 = arith.constant 0 : index
    %c0_57 = arith.constant 0 : index
    %111 = vector.load %arg18[%c0_56, %c0_57] : memref<8x128xf32, #tpu.memory_space<vmem>>, vector<8x128xf32>
    tpu.vector_store %arg18[%c0_56, %c0_57], %110 {strides = array<i32>} : memref<8x128xf32, #tpu.memory_space<vmem>>, vector<8x128xf32>,
    return
  }
  func.func @transform_0(%arg0: i32) -> (i32, i32) {
    %c0_i32 = arith.constant 0 : i32
    %c0_i32_0 = arith.constant 0 : i32
    return %arg0, %c0_i32 : i32, i32
  }
  func.func @transform_1(%arg0: i32) -> (i32, i32) {
    %c0_i32 = arith.constant 0 : i32
    %c0_i32_0 = arith.constant 0 : i32
    return %arg0, %c0_i32 : i32, i32
  }
  func.func @transform_2(%arg0: i32) -> (i32, i32) {
    %c0_i32 = arith.constant 0 : i32
    %c0_i32_0 = arith.constant 0 : i32
    %c0_i32_1 = arith.constant 0 : i32
    return %c0_i32, %c0_i32_0 : i32, i32
  }
  func.func @transform_3(%arg0: i32) -> (i32, i32) {
    %c0_i32 = arith.constant 0 : i32
    %c0_i32_0 = arith.constant 0 : i32
    %c0_i32_1 = arith.constant 0 : i32
    return %c0_i32, %c0_i32_0 : i32, i32
  }
  func.func @transform_4(%arg0: i32) -> (i32, i32) {
    %c0_i32 = arith.constant 0 : i32
    %c0_i32_0 = arith.constant 0 : i32
    %c0_i32_1 = arith.constant 0 : i32
    return %c0_i32, %c0_i32_0 : i32, i32
  }
  func.func @transform_5(%arg0: i32) -> (i32, i32) {
    %c0_i32 = arith.constant 0 : i32
    %c0_i32_0 = arith.constant 0 : i32
    %c0_i32_1 = arith.constant 0 : i32
    return %c0_i32, %c0_i32_0 : i32, i32
  }
  func.func @transform_6(%arg0: i32) -> (i32, i32) {
    %c0_i32 = arith.constant 0 : i32
    %c0_i32_0 = arith.constant 0 : i32
    %c0_i32_1 = arith.constant 0 : i32
    return %c0_i32, %c0_i32_0 : i32, i32
  }
  func.func @transform_7(%arg0: i32) -> (i32, i32) {
    %c0_i32 = arith.constant 0 : i32
    %c0_i32_0 = arith.constant 0 : i32
    %c0_i32_1 = arith.constant 0 : i32
    return %c0_i32, %c0_i32_0 : i32, i32
  }
  func.func @transform_8(%arg0: i32) -> (i32, i32) {
    %c0_i32 = arith.constant 0 : i32
    %c0_i32_0 = arith.constant 0 : i32
    %c0_i32_1 = arith.constant 0 : i32
    return %c0_i32, %c0_i32_0 : i32, i32
  }
  func.func @transform_9(%arg0: i32) -> (i32, i32) {
    %c0_i32 = arith.constant 0 : i32
    %c0_i32_0 = arith.constant 0 : i32
    %c0_i32_1 = arith.constant 0 : i32
    return %c0_i32, %c0_i32_0 : i32, i32
  }
  func.func @transform_10(%arg0: i32) -> (i32, i32) {
    %c0_i32 = arith.constant 0 : i32
    %c0_i32_0 = arith.constant 0 : i32
    %c0_i32_1 = arith.constant 0 : i32
    return %c0_i32, %c0_i32_0 : i32, i32
  }
  func.func @transform_11(%arg0: i32) -> (i32, i32) {
    %c0_i32 = arith.constant 0 : i32
    %c0_i32_0 = arith.constant 0 : i32
    %c0_i32_1 = arith.constant 0 : i32
    return %c0_i32, %c0_i32_0 : i32, i32
  }
  func.func @transform_12(%arg0: i32) -> (i32, i32) {
    %c0_i32 = arith.constant 0 : i32
    %c0_i32_0 = arith.constant 0 : i32
    %c0_i32_1 = arith.constant 0 : i32
    return %c0_i32, %c0_i32_0 : i32, i32
  }
  func.func @transform_13(%arg0: i32) -> (i32, i32) {
    %c0_i32 = arith.constant 0 : i32
    %c0_i32_0 = arith.constant 0 : i32
    %c0_i32_1 = arith.constant 0 : i32
    return %c0_i32, %c0_i32_0 : i32, i32
  }
  func.func @transform_14(%arg0: i32) -> (i32, i32) {
    %c0_i32 = arith.constant 0 : i32
    %c0_i32_0 = arith.constant 0 : i32
    %c0_i32_1 = arith.constant 0 : i32
    return %c0_i32, %c0_i32_0 : i32, i32
  }
  func.func @transform_15(%arg0: i32) -> (i32, i32) {
    %c0_i32 = arith.constant 0 : i32
    %c0_i32_0 = arith.constant 0 : i32
    %c0_i32_1 = arith.constant 0 : i32
    return %c0_i32, %c0_i32_0 : i32, i32
  }
  func.func @transform_16(%arg0: i32) -> (i32, i32) {
    %c0_i32 = arith.constant 0 : i32
    %c0_i32_0 = arith.constant 0 : i32
    %c0_i32_1 = arith.constant 0 : i32
    return %c0_i32, %c0_i32_0 : i32, i32
  }
  func.func @transform_17(%arg0: i32) -> (i32, i32) {
    %c0_i32 = arith.constant 0 : i32
    %c0_i32_0 = arith.constant 0 : i32
    return %arg0, %c0_i32 : i32, i32
  }
}

</mosaic_0001>

<bundles_post_ra>
// kernel: tpu_custom_call.1
= control target key start
LH: loop header
LB: loop body
LE: loop exit
PB: predicated region body
PF: predicated region fallthrough
CT: control target
= control target key end

     0   :  { %s2231_s0 = inlined_call_operand.vmem [shape: f32[8,1], index: 0, kind: input, shape index: {}]   ;;  %s2232_s1 = inlined_call_operand.vmem [shape: f32[8,10], index: 1, kind: input, shape index: {}]   ;;  %s2233_s2 = inlined_call_operand.vmem [shape: f32[1,8], index: 2, kind: input, shape index: {}]   ;;  %s2234_s3 = inlined_call_operand.vmem [shape: f32[8,32], index: 3, kind: input, shape index: {}]   ;;  %s2235_s4 = inlined_call_operand.vmem [shape: f32[8,32], index: 4, kind: input, shape index: {}]   ;;  %s2236_s5 = inlined_call_operand.hbm [shape: f32[1,32], index: 5, kind: input, shape index: {}]   ;;  %s2237_s6 = inlined_call_operand.vmem [shape: f32[32,16], index: 6, kind: input, shape index: {}]   ;;  %s2238_s7 = inlined_call_operand.vmem [shape: f32[1,16], index: 7, kind: input, shape index: {}]   ;;  %s2239_s8 = inlined_call_operand.vmem [shape: bf16[10,256], index: 8, kind: input, shape index: {}]   ;;  %s2240_s9 = inlined_call_operand.vmem [shape: bf16[16,256], index: 9, kind: input, shape index: {}]   ;;  %s2241_s10 = inlined_call_operand.vmem [shape: f32[1,256], index: 10, kind: input, shape index: {}]   ;;  %s2242_s11 = inlined_call_operand.hbm [shape: bf16[256,256], index: 11, kind: input, shape index: {}]   ;;  %s2243_s12 = inlined_call_operand.vmem [shape: f32[1,256], index: 12, kind: input, shape index: {}]   ;;  %s2244_s13 = inlined_call_operand.hbm [shape: bf16[256,256], index: 13, kind: input, shape index: {}]   ;;  %s2245_s14 = inlined_call_operand.vmem [shape: f32[1,256], index: 14, kind: input, shape index: {}]   ;;  %s2246_s15 = inlined_call_operand.hbm [shape: bf16[256,128], index: 15, kind: input, shape index: {}]   ;;  %s2247_s16 = inlined_call_operand.vmem [shape: f32[1,128], index: 16, kind: input, shape index: {}]   ;;  %s2248_s17 = inlined_call_operand.hbm [shape: f32[8,128], index: 17, kind: output, shape index: {}]  }
   0x1   :  { %2250 = sst [smem:[#allocation15_spill]] %s2231_s0 }
   0x2   :  { %2251 = sst [smem:[#allocation16_spill]] %s2232_s1 }
   0x3   :  { %2252 = sst [smem:[#allocation17_spill]] %s2248_s17 }
   0x4   :  { %22 = vsyncpa [#allocation3], 0 }
   0x5   :  { %23 = vsyncpa [#allocation6], 0 }
   0x6   :  { %24 = vsyncpa [#allocation9], 0 }
   0x7   :  { %25 = vsyncpa [#allocation4], 0  ;;  %s1949_s24 = smov [#allocation5]   ;;  %s1831_s28 = scalar_lea.hbm %s2242_s11, 4096 }
   0x8   :  { %s61_s25 = sshll.u32 %s1949_s24, 4  ;;  %p1832_p0 = scmp.ne.s32.totalorder %s2242_s11, %s1831_s28  ;;  %s62_s25 = int_to_ptr.vmem [resolvable:$true] %s61_s25 }
   0x9   :  { %p1835_p1 = scmp.lt.u32.totalorder %s1831_s28, %s2242_s11 }
   0xb   :  { %p1837_p2 = pnand %p1835_p1, %p1832_p0 }
   0xd   :  { %1840 = shalt.err (!%p1837_p2)
}
   0xe   :  { %s1841_s19 = scalar_lea.vmem %s62_s25, 4096  ;;  %p1846_p4 = scmp.lt.s32.totalorder %s62_s25, %s62_s25 }
   0xf   :  { %p1842_p3 = scmp.ne.s32.totalorder %s62_s25, %s1841_s19  ;;  %p1847_p5 = scmp.lt.s32.totalorder %s1841_s19, %s1841_s19 }
  0x11   :  { %p1848_p6 = por %p1847_p5, %p1846_p4 }
  0x13   :  { %p1849_p7 = pnand %p1848_p6, %p1842_p3 }
  0x15   :  { %1852 = shalt.err (!%p1849_p7)
}
  0x16   :  { %s1950_s1 = smov 128   ;;  %s1951_s20 = smov 8  }
  0x17   :  { %67 = dma.hbm_to_vmem [thread:$0]  %s2242_s11, 4096, %s62_s25, [#allocation6], %s1950_s1, %s1950_s1, %s1951_s20  }
  0x18   :  { %s1952_s23 = smov [#allocation2]   ;;  %s1953_s26 = smov [#allocation7]  }
  0x19   :  { %s42_s24 = sshll.u32 %s1952_s23, 4  ;;  %s75_s27 = sshll.u32 %s1953_s26, 4  ;;  %s43_s24 = int_to_ptr.vmem [resolvable:$true] %s42_s24  ;;  %s76_s27 = int_to_ptr.vmem [resolvable:$true] %s75_s27 }
  0x1a   :  { %s1853_s0 = scalar_lea.hbm %s2236_s5, 16 }
  0x1b   :  { %p1854_p8 = scmp.ne.s32.totalorder %s2236_s5, %s1853_s0  ;;  %p1857_p9 = scmp.lt.u32.totalorder %s1853_s0, %s2236_s5 }
  0x1d   :  { %p1859_p10 = pnand %p1857_p9, %p1854_p8 }
  0x1f   :  { %1862 = shalt.err (!%p1859_p10)
}
  0x20   :  { %s1863_s11 = scalar_lea.vmem %s43_s24, 16  ;;  %s1867_s25 = scalar_lea.vmem %s43_s24, 32 }
  0x21   :  { %p1864_p11 = scmp.ne.s32.totalorder %s43_s24, %s1863_s11  ;;  %p1868_p12 = scmp.lt.s32.totalorder %s43_s24, %s43_s24 }
  0x22   :  { %p1869_p13 = scmp.lt.s32.totalorder %s1867_s25, %s1863_s11 }
  0x24   :  { %p1870_p0 = por %p1869_p13, %p1868_p12 }
  0x26   :  { %p1871_p1 = pnand %p1870_p0, %p1864_p11 }
  0x28   :  { %1874 = shalt.err (!%p1871_p1)
}
  0x29   :  { %45 = dma.hbm_to_vmem [thread:$0]  %s2236_s5, 16, %s43_s24, [#allocation3]  }
  0x2a   :  { %s1875_s17 = scalar_lea.hbm %s2244_s13, 4096 }
  0x2b   :  { %p1876_p2 = scmp.ne.s32.totalorder %s2244_s13, %s1875_s17  ;;  %p1879_p3 = scmp.lt.u32.totalorder %s1875_s17, %s2244_s13 }
  0x2d   :  { %p1881_p4 = pnand %p1879_p3, %p1876_p2 }
  0x2f   :  { %1884 = shalt.err (!%p1881_p4)
}
  0x30   :  { %s1885_s18 = scalar_lea.vmem %s76_s27, 4096  ;;  %p1890_p6 = scmp.lt.s32.totalorder %s76_s27, %s76_s27 }
  0x31   :  { %p1886_p5 = scmp.ne.s32.totalorder %s76_s27, %s1885_s18  ;;  %p1891_p7 = scmp.lt.s32.totalorder %s1885_s18, %s1885_s18 }
  0x33   :  { %p1892_p8 = por %p1891_p7, %p1890_p6 }
  0x35   :  { %p1893_p9 = pnand %p1892_p8, %p1886_p5 }
  0x37   :  { %1896 = shalt.err (!%p1893_p9)
}
  0x38   :  { %81 = dma.hbm_to_vmem [thread:$0]  %s2244_s13, 4096, %s76_s27, [#allocation6], %s1950_s1, %s1950_s1, %s1951_s20  }
  0x39   :  { %s1954_s19 = smov [#allocation8]   ;;  %s1897_s22 = scalar_lea.hbm %s2246_s15, 2048 }
  0x3a   :  { %s89_s11 = sshll.u32 %s1954_s19, 4  ;;  %p1898_p10 = scmp.ne.s32.totalorder %s2246_s15, %s1897_s22  ;;  %s90_s11 = int_to_ptr.vmem [resolvable:$true] %s89_s11 }
  0x3b   :  { %p1901_p11 = scmp.lt.u32.totalorder %s1897_s22, %s2246_s15 }
  0x3d   :  { %p1903_p12 = pnand %p1901_p11, %p1898_p10 }
  0x3f   :  { %1906 = shalt.err (!%p1903_p12)
}
  0x40   :  { %s1907_s29 = scalar_lea.vmem %s90_s11, 2048  ;;  %p1912_p0 = scmp.lt.s32.totalorder %s90_s11, %s90_s11 }
  0x41   :  { %p1908_p13 = scmp.ne.s32.totalorder %s90_s11, %s1907_s29  ;;  %p1913_p1 = scmp.lt.s32.totalorder %s1907_s29, %s1907_s29 }
  0x43   :  { %p1914_p2 = por %p1913_p1, %p1912_p0 }
  0x45   :  { %p1915_p3 = pnand %p1914_p2, %p1908_p13 }
  0x47   :  { %1918 = shalt.err (!%p1915_p3)
}
  0x48   :  { %s1955_s13 = smov 64   ;;  %s1956_s1 = smov 4  }
  0x49   :  { %95 = dma.hbm_to_vmem [thread:$0]  %s2246_s15, 2048, %s90_s11, [#allocation9], %s1955_s13, %s1955_s13, %s1956_s1  }
  0x4a   :  { %1941 = dma.done.wait [#allocation3], 16  }
  0x4b   :  { %1942 = vsyncadd [#allocation3], 4294967280 }
  0x4c   :  { %1943 = dma.done.wait [#allocation6], 8192  }
  0x4d   :  { %1944 = vsyncadd [#allocation6], 4294959104 }
  0x4e   :  { %1945 = dma.done.wait [#allocation9], 2048  }
  0x4f   :  { %1946 = vsyncadd [#allocation9], 4294965248  ;;  %v1957_v0 = vmov 0   ;;  %s2253_s18 = sld [smem:[#allocation15_spill]]  ;;  %v335_v2 = vld [vmem:[%s2235_s4] sm:$0xff]  ;;  %v1958_v3 = vmov 0.0  }
  0x50   :  { %1680 = vset.pattern.permute.xlu0 %v1957_v0  ;;  %1629 = vmatprep.subr.mxu0 %v1958_v3  ;;  %vm1959_vm0 = vmmov 0   ;;  %v1496_v4 = vld [vmem:[%s2233_s2] ss:$0 sm:$0xff]  ;;  %v1960_v17 = vmov 683565275   ;;  %vm336_vm11 = vcmask 64512  }
  0x51   :  { %1631 = vmatprep.mubr.msk.f32.mxu0 %vm1959_vm0, %v1958_v3  ;;  %1630 = vmatpush3.msra.mxu0 %v335_v2  ;;  %v1961_v19 = vmov 2475754826   ;;  %v1962_v22 = vmov 2131351028   ;;  %v1963_v25 = vmov 2102212464  }
  0x52   :  { %1634 = vmatprep.subr.mxu0 %v1958_v3  ;;  %v1964_v28 = vmov 920167782   ;;  %v1965_v31 = vmov 1326507024   ;;  %s2254_s24 = sld [smem:[#allocation16_spill]]  ;;  %s1968_s4 = smov [#allocation10]  }
  0x53   :  { %s1485_s11 = sshll.u32 %s1968_s4, 4  ;;  %s1486_s11 = int_to_ptr.vmem [resolvable:$true] %s1485_s11 }
  0x54   :  { %s1919_s25 = scalar_lea.vmem %s1486_s11, 128  ;;  %p1924_p5 = scmp.lt.s32.totalorder %s1486_s11, %s1486_s11 }
  0x55   :  { %v113_v1 = vld [vmem:[%s2253_s18] sm:$0xff]  ;;  %p1920_p4 = scmp.ne.s32.totalorder %s1486_s11, %s1919_s25  ;;  %p1925_p6 = scmp.lt.s32.totalorder %s1919_s25, %s1919_s25 }
  0x56   :  { %117 = vperm.xlu0 %1680, %v113_v1  }
  0x57   :  { %p1926_p7 = por %p1925_p6, %p1924_p5 }
  0x59   :  { %p1927_p8 = pnand %p1926_p7, %p1920_p4 }
  0xd5   :  { %v118_v5 = vpop.permute.xlu0 %117 }
  0xd6   :  { %v2127_v6 = vmul.f32 %v1496_v4, %v118_v5 }
  0xd8   :  { %v130_v7 = vand.u32 2139095040, %v2127_v6  ;;  %v127_v11 = vand.u32 2147483647, %v2127_v6  ;;  %vm129_vm8 = vcmp.lt.s32.totalorder %v2127_v6, 0 }
  0xda   :  { %v131_v8 = vshrl.u32 %v130_v7, 23  ;;  %v134_v14 = vand.u32 8388607, %v127_v11  ;;  %vm128_vm9 = vcmp.le.f32.partialorder %v127_v11, 0.7853982 }
  0xdc   :  { %v1497_v9 = vadd.s32 4294967169, %v131_v8  ;;  %v135_v33 = vor.u32 8388608, %v134_v14 }
  0xde   :  { %v137_v10 = vadd.s32 1, %v1497_v9  ;;  %v175_v47 = vshll.u32 %v135_v33, 8 }
  0xe0   :  { %vm138_vm1 = vcmp.gt.s32.totalorder %v137_v10, 0 }
  0xe1   :  { %v139_v12 = vsel %vm138_vm1, %v137_v10, 0  ;;  %vm219_vm1 = vweird.f32 %v2127_v6 }
  0xe2   :  { %v141_v13 = vand.u32 31, %v139_v12  ;;  %v140_v16 = vshrl.u32 %v139_v12, 5 }
  0xe4   :  { %v142_v15 = vsub.s32 32, %v141_v13  ;;  %v144_v18 = vshll.u32 %v1960_v17, %v141_v13  ;;  %v147_v20 = vshll.u32 %v1961_v19, %v141_v13  ;;  %v150_v24 = vshll.u32 %v1962_v22, %v141_v13 }
  0xe5   :  { %v153_v27 = vshll.u32 %v1963_v25, %v141_v13  ;;  %v156_v30 = vshll.u32 %v1964_v28, %v141_v13  ;;  %vm159_vm2 = vcmp.lt.s32.totalorder %v140_v16, 1  ;;  %vm162_vm3 = vcmp.lt.s32.totalorder %v140_v16, 4 }
  0xe6   :  { %v145_v21 = vshrl.u32 %v1961_v19, %v142_v15  ;;  %v148_v23 = vshrl.u32 %v1962_v22, %v142_v15  ;;  %v151_v26 = vshrl.u32 %v1963_v25, %v142_v15  ;;  %v154_v29 = vshrl.u32 %v1964_v28, %v142_v15 }
  0xe7   :  { %v157_v32 = vshrl.u32 %v1965_v31, %v142_v15  ;;  %v143_v42 = vshrl.u32 %v1960_v17, %v142_v15  ;;  %vm161_vm4 = vcmp.lt.s32.totalorder %v140_v16, 3  ;;  %vm160_vm5 = vcmp.lt.s32.totalorder %v140_v16, 2 }
  0xe8   :  { %v146_v34 = vor.u32 %v145_v21, %v144_v18  ;;  %v149_v35 = vor.u32 %v148_v23, %v147_v20  ;;  %v152_v36 = vor.u32 %v151_v26, %v150_v24  ;;  %v155_v37 = vor.u32 %v154_v29, %v153_v27 }
  0xe9   :  { %v158_v38 = vor.u32 %v157_v32, %v156_v30 }
  0xea   :  { %v164_v39 = vsel %vm162_vm3, %v152_v36, 2102212464  ;;  %v167_v40 = vsel %vm159_vm2, %v146_v34, %v149_v35  ;;  %v171_v41 = vsel %vm159_vm2, %v149_v35, %v152_v36  ;;  %v168_v43 = vsel %vm162_vm3, %v155_v37, 920167782 }
  0xeb   :  { %v172_v44 = vsel %vm162_vm3, %v158_v38, 1326507024  ;;  %v169_v45 = vsel %vm161_vm4, %v152_v36, %v168_v43  ;;  %v163_v48 = vsel %vm159_vm2, %v143_v42, %v146_v34  ;;  %v165_v49 = vsel %vm161_vm4, %v149_v35, %v164_v39  ;;  %v334_v39 = vld [vmem:[%s2234_s3] sm:$0xff]  ;;  %v503_v43 = vld [vmem:[%s2237_s6 + $0x8] sm:$0xff] }
  0xec   :  { %v173_v46 = vsel %vm161_vm4, %v155_v37, %v172_v44  ;;  %v170_v50 = vsel %vm160_vm5, %v167_v40, %v169_v45  ;;  %v166_v56 = vsel %vm160_vm5, %v163_v48, %v165_v49  ;;  %v504_v44 = vld [vmem:[%s2237_s6 + $0x10] sm:$0xff]  ;;  %v1966_v45 = vmov 0.0|0.0  }
  0xed   :  { %v174_v51 = vsel %vm160_vm5, %v171_v41, %v173_v46  ;;  %v2136_v54 = vmul.u32.u64.low %v175_v47, %v170_v50  ;;  %v2137_v55 = vmul.u32.u64.high %v175_v47, %v170_v50, %v2136_v54  ;;  %v182_v58 = vmul.u32 %v175_v47, %v166_v56 }
  0xee   :  { %v2133_v52 = vmul.u32.u64.low %v175_v47, %v174_v51  ;;  %v2134_v53 = vmul.u32.u64.high %v175_v47, %v174_v51, %v2133_v52  ;;  %v505_v47 = vld [vmem:[%s2237_s6 + $0x18] sm:$0xff]  ;;  %v1507_v51 = vld [vmem:[#allocation2] ss:$0 sm:$0xff]  ;;  %vm661_vm4 = vcmask 1044480   ;;  %vm604_vm5 = vcmask 130048  }
  0xef   :  { %v185_v57 = vadd.s32 1, %v2137_v55 }
  0xf0   :  { %vm184_vm6 = vc.u32 %v2134_v53, %v2136_v54  ;;  %v183_v9 = vadd.s32 %v2136_v54, %v2134_v53 }
  0xf1   :  { %v186_v59 = vsel %vm184_vm6, %v185_v57, %v2137_v55  ;;  %vm657_vm6 = vcmask 80896  }
  0xf2   :  { %v187_v60 = vadd.s32 %v186_v59, %v182_v58 }
  0xf4   :  { %v188_v61 = vadd.s32 536870912, %v187_v60 }
  0xf6   :  { %v189_v62 = vshrl.u32 %v188_v61, 30 }
  0xf8   :  { %v190_v63 = vshll.u32 %v189_v62, 30  ;;  %v213_v22 = vsub.s32 4, %v189_v62 }
  0xfa   :  { %v191_v1 = vsub.s32 %v187_v60, %v190_v63  ;;  %v214_v26 = vsel %vm129_vm8, %v213_v22, %v189_v62  ;;  %v1695_v22 = vld [vmem:[#allocation5 + $0x20] ss:$8 sps:$4 sm:$0xff]  }
  0xfb   :  { %v216_v27 = vsel %vm128_vm9, 0, %v214_v26  ;;  %v1701_v26 = vld [vmem:[#allocation5 + $0x40] ss:$8 sps:$4 sm:$0xff]  }
  0xfc   :  { %v193_v2 = vsub.s32 0, %v191_v1  ;;  %v220_v28 = vadd.s32 3, %v216_v27  ;;  %v324_v29 = vand.u32 3, %v216_v27  ;;  %v1704_v27 = vld [vmem:[#allocation5 + $0x50] ss:$8 sps:$4 sm:$0xff]  }
  0xfe   :  { %v1498_v4 = vmin.u32 %v193_v2, %v191_v1  ;;  %v221_v30 = vand.u32 3, %v220_v28  ;;  %vm329_vm10 = vcmp.eq.s32.totalorder %v324_v29, 2  ;;  %vm326_vm14 = vcmp.eq.s32.totalorder %v324_v29, 0  ;;  %v1683_v2 = vld [vmem:[%s2240_s9 + $0x4] ss:$8 sps:$4 sm:$0xff]  }
  0xff   :  { %vm325_vm15 = vcmp.lt.s32.totalorder %v324_v29, 2  ;;  %v1705_v28 = vld [vmem:[#allocation5 + $0x64] ss:$8 sps:$4 sm:$0xff]   ;;  %v1707_v29 = vld [vmem:[#allocation5 + $0x60] ss:$8 sps:$4 sm:$0xff]  }
 0x100   :  { %v195_v5 = vclz %v1498_v4  ;;  %vm223_vm12 = vcmp.eq.s32.totalorder %v221_v30, 0  ;;  %vm226_vm13 = vcmp.eq.s32.totalorder %v221_v30, 2  ;;  %vm222_vm2 = vcmp.lt.s32.totalorder %v221_v30, 2  ;;  %v1681_v4 = vld [vmem:[%s2240_s9] ss:$8 sps:$4 sm:$0xff]  }
 0x101   :  { %v1708_v30 = vld [vmem:[#allocation5 + $0x74] ss:$8 sps:$4 sm:$0xff]  }
 0x102   :  { %v1499_v7 = vadd.s32 4294967294, %v195_v5  ;;  %v1684_v5 = vld [vmem:[%s2239_s8 + $0x4] ss:$8 sps:$4 sm:$0x1f]  }
 0x104   :  { %vm1500_vm7 = vcmp.lt.s32.totalorder %v1499_v7, 0 }
 0x105   :  { %v198_v8 = vsel %vm1500_vm7, 0, %v1499_v7  ;;  %v1687_v7 = vld [vmem:[#allocation5 + $0x4] ss:$8 sps:$4 sm:$0xff]  }
 0x106   :  { %v199_v10 = vsub.s32 32, %v198_v8  ;;  %v203_v12 = vsub.s32 4294967266, %v198_v8  ;;  %v200_v13 = vshll.u32 %v191_v1, %v198_v8  ;;  %v1689_v8 = vld [vmem:[#allocation5] ss:$8 sps:$4 sm:$0xff]   ;;  %957 = vmatprep.subr.bf16.mxu1 %v1687_v7 }
 0x107   :  { %958 = vmatpush1.bf16.msra.mxu1 %v1689_v8 }
 0x108   :  { %v201_v14 = vshrl.u32 %v183_v9, %v199_v10  ;;  %v204_v15 = vadd.s32 127, %v203_v12  ;;  %v1690_v9 = vld [vmem:[#allocation5 + $0x14] ss:$8 sps:$4 sm:$0xff]   ;;  %v1692_v10 = vld [vmem:[#allocation5 + $0x10] ss:$8 sps:$4 sm:$0xff]  }
 0x109   :  { %959 = vmatprep.subr.bf16.mxu1 %v1690_v9  ;;  %v1508_v12 = vld [vmem:[%s2238_s7] ss:$0 sm:$0xff] }
 0x10a   :  { %v202_v16 = vor.u32 %v201_v14, %v200_v13  ;;  %v205_v17 = vshll.u32 %v204_v15, 23  ;;  %v1686_v13 = vld [vmem:[%s2239_s8] ss:$8 sps:$4 sm:$0x1f]  }
 0x10b   :  { %960 = vmatpush1.bf16.msra.mxu1 %v1692_v10 }
 0x10c   :  { %v206_v18 = vor.u32 4788187, %v205_v17  ;;  %v209_v20 = vcvt.s32.f32 %v202_v16 }
 0x10e   :  { %v207_v19 = vand.u32 2147483647, %v206_v18  ;;  %v663_v18 = vsel %vm661_vm4, %v1686_v13, 0 }
 0x110   :  { %v210_v21 = vmul.f32 %v209_v20, %v207_v19  ;;  %v587_v19 = vld [vmem:[%s2254_s24] sm:$0xff] }
 0x111   :  { %v588_v20 = vpack.c.bf16 %v587_v19, %v587_v19 }
 0x112   :  { %v211_v23 = vxor.u32 2147483648, %v210_v21 }
 0x114   :  { %v212_v24 = vsel %vm129_vm8, %v211_v23, %v210_v21  ;;  %v1693_v21 = vld [vmem:[#allocation5 + $0x24] ss:$8 sps:$4 sm:$0xff]   ;;  %v1696_v23 = vld [vmem:[#allocation5 + $0x34] ss:$8 sps:$4 sm:$0xff]  }
 0x115   :  { %v215_v25 = vsel %vm128_vm9, %v2127_v6, %v212_v24  ;;  %v502_v6 = vld [vmem:[%s2237_s6] sm:$0xff]  ;;  %961 = vmatprep.subr.bf16.mxu1 %v1693_v21 }
 0x116   :  { %1799 = vcosq.f32 %v215_v25  ;;  %v1651_v46 = vpack.c.bf16 %v503_v43, %v502_v6  ;;  %962 = vmatpush1.bf16.msra.mxu1 %v1695_v22  ;;  %v1698_v24 = vld [vmem:[#allocation5 + $0x30] ss:$8 sps:$4 sm:$0xff]   ;;  %v1729_v6 = vld [vmem:[#allocation5 + $0xe4] ss:$8 sps:$4 sm:$0xff]   ;;  %v1731_v43 = vld [vmem:[#allocation5 + $0xe0] ss:$8 sps:$4 sm:$0xff]  }
 0x117   :  { %1801 = vsinq.f32 %v215_v25  ;;  %963 = vmatprep.subr.bf16.mxu1 %v1696_v23  ;;  %v1699_v25 = vld [vmem:[#allocation5 + $0x44] ss:$8 sps:$4 sm:$0xff]  }
 0x11a   :  { %964 = vmatpush1.bf16.msra.mxu1 %v1698_v24 }
 0x11b   :  { %965 = vmatprep.subr.bf16.mxu1 %v1699_v25 }
 0x11e   :  { %966 = vmatpush1.bf16.msra.mxu1 %v1701_v26 }
 0x120   :  { %v1800_v31 = vpop.eup %1799 }
 0x121   :  { %v1802_v32 = vpop.eup %1801  ;;  %v227_v33 = vxor.u32 2147483648, %v1800_v31 }
 0x122   :  { %v224_v34 = vxor.u32 2147483648, %v1802_v32 }
 0x123   :  { %v331_v11 = vsel %vm329_vm10, %v227_v33, %v1802_v32  ;;  %v228_v36 = vsel %vm226_vm13, %v227_v33, %v1802_v32  ;;  %v1711_v32 = vld [vmem:[#allocation5 + $0x84] ss:$8 sps:$4 sm:$0xff]   ;;  %v1713_v33 = vld [vmem:[#allocation5 + $0x80] ss:$8 sps:$4 sm:$0xff]  }
 0x124   :  { %v225_v35 = vsel %vm223_vm12, %v1800_v31, %v224_v34  ;;  %v328_v37 = vsel %vm326_vm14, %v1800_v31, %v224_v34  ;;  %v1710_v31 = vld [vmem:[#allocation5 + $0x70] ss:$8 sps:$4 sm:$0xff]   ;;  %v1714_v34 = vld [vmem:[#allocation5 + $0x94] ss:$8 sps:$4 sm:$0xff]  }
 0x125   :  { %v332_v38 = vsel %vm325_vm15, %v328_v37, %v331_v11  ;;  %v229_v41 = vsel %vm222_vm2, %v225_v35, %v228_v36  ;;  %v1716_v11 = vld [vmem:[#allocation5 + $0x90] ss:$8 sps:$4 sm:$0xff]   ;;  %v1717_v35 = vld [vmem:[#allocation5 + $0xa4] ss:$8 sps:$4 sm:$0xff]   ;;  %v1719_v36 = vld [vmem:[#allocation5 + $0xa0] ss:$8 sps:$4 sm:$0xff]  }
 0x126   :  { %v333_v40 = vsel %vm219_vm1, nan, %v332_v38  ;;  %v230_v42 = vsel %vm219_vm1, nan, %v229_v41  ;;  %v1720_v37 = vld [vmem:[#allocation5 + $0xb4] ss:$8 sps:$4 sm:$0xff]   ;;  %v1722_v38 = vld [vmem:[#allocation5 + $0xb0] ss:$8 sps:$4 sm:$0xff]  }
 0x127   :  { %1632 = vmatmul.mubr.msk.f32.vlgmr.msra.gmra.mrb[0].mxu0 %vm336_vm11, %v333_v40  ;;  %v1725_v40 = vld [vmem:[#allocation5 + $0xc0] ss:$8 sps:$4 sm:$0xff]   ;;  %v1726_v41 = vld [vmem:[#allocation5 + $0xd4] ss:$8 sps:$4 sm:$0xff]  }
 0x128   :  { %1635 = vmatpush3.msra.mxu0 %v334_v39  ;;  %1636 = vmatprep.mubr.msk.f32.mxu0 %vm1959_vm0, %v1958_v3  ;;  %v1723_v39 = vld [vmem:[#allocation5 + $0xc4] ss:$8 sps:$4 sm:$0xff]  }
 0x129   :  { %1650 = vmatprep.subr.bf16.mxu0 %v1966_v45 }
 0x12b   :  { %1637 = vmatmul.mubr.msk.f32.vlgmr.msra.gmra.mrb[2].mxu0 %vm336_vm11, %v230_v42  ;;  %v1728_v42 = vld [vmem:[#allocation5 + $0xd0] ss:$8 sps:$4 sm:$0xff]  }
 0x12c   :  { %1647 = vmatprep.mubr.msk.f32.mxu0 %vm1959_vm0, %v1958_v3  ;;  %1652 = vmatpush3.bf16.msra.mxu0 %v1651_v46  ;;  %v1654_v3 = vpack.c.bf16 %v505_v47, %v504_v44  ;;  %vm513_vm0 = vcmask 261120   ;;  %v1732_v44 = vld [vmem:[#allocation5 + $0xf4] ss:$8 sps:$4 sm:$0xff]   ;;  %v1735_v46 = vld [vmem:[#allocation7] ss:$8 sps:$4 sm:$0xff]  }
 0x12d   :  { %1653 = vmatprep.subr.bf16.mxu0 %v1966_v45  ;;  %v1734_v45 = vld [vmem:[#allocation5 + $0xf0] ss:$8 sps:$4 sm:$0xff]   ;;  %v1737_v47 = vld [vmem:[#allocation7 + $0x4] ss:$8 sps:$4 sm:$0xff]  }
 0x130   :  { %1655 = vmatpush3.bf16.msra.mxu0 %v1654_v3  ;;  %v1740_v3 = vld [vmem:[#allocation7 + $0x14] ss:$8 sps:$4 sm:$0xff]  }
 0x131   :  { %608 = vmatprep.subr.bf16.mxu0 %v1683_v2 }
 0x1fa   :  { %v406_v48 = vpop.f32.mrb[0].mxu0 }
 0x1fb   :  { %v1633_v49 = vpop.f32.mrb[1].mxu0 }
 0x1fc   :  { %v1743_v49 = vld [vmem:[#allocation7 + $0x24] ss:$8 sps:$4 sm:$0xff]  }
 0x1fe   :  { %v479_v50 = vpop.f32.mrb[2].mxu0 }
 0x1ff   :  { %v480_v52 = vadd.f32 %v479_v50, %v406_v48  ;;  %v1638_v53 = vpop.f32.mrb[3].mxu0  ;;  %v1738_v48 = vld [vmem:[#allocation7 + $0x10] ss:$8 sps:$4 sm:$0xff]   ;;  %v1741_v50 = vld [vmem:[#allocation7 + $0x20] ss:$8 sps:$4 sm:$0xff]  }
 0x200   :  { %v1749_v53 = vld [vmem:[#allocation7 + $0x44] ss:$8 sps:$4 sm:$0xff]  }
 0x201   :  { %v490_v54 = vadd.f32 %v1507_v51, %v480_v52  ;;  %v1746_v51 = vld [vmem:[#allocation7 + $0x34] ss:$8 sps:$4 sm:$0xff]   ;;  %v1744_v52 = vld [vmem:[#allocation7 + $0x30] ss:$8 sps:$4 sm:$0xff]  }
 0x203   :  { %v491_v55 = vmin.f32 %v490_v54, 20.0  ;;  %vm498_vm3 = vcmp.gt.f32.partialorder %v490_v54, 20.0 }
 0x205   :  { %v492_v56 = vmul.f32 1.442695, %v491_v55  ;;  %v711_v55 = vlaneseq }
 0x207   :  { %1803 = vpow2.f32 %v492_v56  ;;  %v712_v56 = vshrl.u32 %v711_v55, 7  ;;  %v1779_v55 = vld [vmem:[#allocation7 + $0xe4] ss:$8 sps:$4 sm:$0xff]  }
 0x211   :  { %v1804_v57 = vpop.eup %1803 }
 0x212   :  { %v494_v58 = vadd.f32 2.0, %v1804_v57 }
 0x214   :  { %v495_v59 = vmul.f32 %v1804_v57, %v494_v58 }
 0x216   :  { %v496_v60 = vadd.f32 2.0, %v495_v59  ;;  %v499_v61 = vmul.f32 %v495_v59, %v490_v54 }
 0x218   :  { %1805 = vrcp.f32 %v496_v60 }
 0x222   :  { %v1806_v62 = vpop.eup %1805 }
 0x223   :  { %v500_v63 = vmul.f32 %v1806_v62, %v499_v61  ;;  %v2191_v61 = vsub.s32 0, %v712_v56  ;;  %v709_v62 = vld [vmem:[%s2241_s10] sm:$0x3] }
 0x225   :  { %v501_v1 = vsel %vm498_vm3, %v490_v54, %v500_v63  ;;  %v1747_v54 = vld [vmem:[#allocation7 + $0x40] ss:$8 sps:$4 sm:$0xff]   ;;  %v2196_v63 = vsub.s32 1, %v712_v56 }
 0x226   :  { %1648 = vmatmul.mubr.msk.f32.vlgmr.msra.gmra.mrb[4].mxu0 %vm513_vm0, %v501_v1  ;;  %v714_v1 = vrot.slane %v709_v62, %v2191_v61  ;;  %v1777_v56 = vld [vmem:[#allocation7 + $0xe0] ss:$8 sps:$4 sm:$0xff]  }
 0x227   :  { %640 = vmatprep.mubr.bf16.mxu0 %v1957_v0  ;;  %609 = vmatpush1.bf16.msra.mxu0 %v1681_v4  ;;  %v718_v4 = vrot.slane %v709_v62, %v2196_v63 }
 0x228   :  { %1515 = vmatprep.subr.msk.bf16.mxu0 %vm661_vm4, %v1684_v5 }
 0x2f9   :  { %v583_v14 = vpop.f32.mrb[4].mxu0 }
 0x2fa   :  { %v584_v15 = vadd.f32 %v1508_v12, %v583_v14  ;;  %v1649_v16 = vpop.f32.mrb[5].mxu0 }
 0x2fb   :  { %v1967_v16 = vmov 1101021600  }
 0x2fc   :  { %v591_v17 = vpack.c.bf16 %v584_v15, %v584_v15 }
 0x2fe   :  { %1512 = vmatmul.mubr.msk.bf16.vlgmr.msra.gmra.mrb[8].mxu0 %vm604_vm5, %v591_v17 }
 0x2ff   :  { %669 = vmatpush1.bf16.msra.mxu0 %v663_v18  ;;  %700 = vmatprep.mubr.bf16.mxu0 %v1957_v0  ;;  %v1702_v0 = vld [vmem:[#allocation5 + $0x54] ss:$8 sps:$4 sm:$0xff]  }
 0x300   :  { %967 = vmatprep.subr.bf16.mxu1 %v1702_v0  ;;  %1232 = vmatprep.subr.bf16.mxu0 %v1737_v47  ;;  %v1762_v47 = vld [vmem:[#allocation7 + $0x90] ss:$8 sps:$4 sm:$0xff]  }
 0x301   :  { %968 = vmatpush1.bf16.msra.mxu1 %v1704_v27 }
 0x302   :  { %969 = vmatprep.subr.bf16.mxu1 %v1705_v28 }
 0x305   :  { %970 = vmatpush1.bf16.msra.mxu1 %v1707_v29 }
 0x306   :  { %1516 = vmatmul.mubr.msk.bf16.vlgmr.msra.gmra.mrb[12].mxu0 %vm657_vm6, %v588_v20  ;;  %971 = vmatprep.subr.bf16.mxu1 %v1708_v30 }
 0x307   :  { %1233 = vmatpush1.bf16.msra.mxu0 %v1735_v46  ;;  %v1764_v46 = vld [vmem:[#allocation7 + $0x94] ss:$8 sps:$4 sm:$0xff]  }
 0x308   :  { %1234 = vmatprep.subr.bf16.mxu0 %v1740_v3  ;;  %v1767_v3 = vld [vmem:[#allocation7 + $0xa4] ss:$8 sps:$4 sm:$0xff]  }
 0x309   :  { %972 = vmatpush1.bf16.msra.mxu1 %v1710_v31 }
 0x30a   :  { %973 = vmatprep.subr.bf16.mxu1 %v1711_v32 }
 0x30b   :  { %1235 = vmatpush1.bf16.msra.mxu0 %v1738_v48  ;;  %v1765_v48 = vld [vmem:[#allocation7 + $0xa0] ss:$8 sps:$4 sm:$0xff]  }
 0x30c   :  { %1236 = vmatprep.subr.bf16.mxu0 %v1743_v49  ;;  %v1768_v49 = vld [vmem:[#allocation7 + $0xb0] ss:$8 sps:$4 sm:$0xff]  }
 0x30d   :  { %974 = vmatpush1.bf16.msra.mxu1 %v1713_v33 }
 0x30e   :  { %975 = vmatprep.subr.bf16.mxu1 %v1714_v34 }
 0x30f   :  { %1237 = vmatpush1.bf16.msra.mxu0 %v1741_v50  ;;  %v1770_v50 = vld [vmem:[#allocation7 + $0xb4] ss:$8 sps:$4 sm:$0xff]  }
 0x310   :  { %1238 = vmatprep.subr.bf16.mxu0 %v1746_v51  ;;  %v1773_v51 = vld [vmem:[#allocation7 + $0xc4] ss:$8 sps:$4 sm:$0xff]  }
 0x311   :  { %976 = vmatpush1.bf16.msra.mxu1 %v1716_v11 }
 0x312   :  { %977 = vmatprep.subr.bf16.mxu1 %v1717_v35 }
 0x313   :  { %1239 = vmatpush1.bf16.msra.mxu0 %v1744_v52  ;;  %v1771_v52 = vld [vmem:[#allocation7 + $0xc0] ss:$8 sps:$4 sm:$0xff]  }
 0x314   :  { %1240 = vmatprep.subr.bf16.mxu0 %v1749_v53  ;;  %v1776_v53 = vld [vmem:[#allocation7 + $0xd4] ss:$8 sps:$4 sm:$0xff]  }
 0x315   :  { %978 = vmatpush1.bf16.msra.mxu1 %v1719_v36 }
 0x316   :  { %979 = vmatprep.subr.bf16.mxu1 %v1720_v37 }
 0x317   :  { %1241 = vmatpush1.bf16.msra.mxu0 %v1747_v54  ;;  %v1774_v54 = vld [vmem:[#allocation7 + $0xd0] ss:$8 sps:$4 sm:$0xff]  }
 0x319   :  { %980 = vmatpush1.bf16.msra.mxu1 %v1722_v38 }
 0x31a   :  { %981 = vmatprep.subr.bf16.mxu1 %v1723_v39  ;;  %v1752_v39 = vld [vmem:[#allocation7 + $0x54] ss:$8 sps:$4 sm:$0xff]  }
 0x31b   :  { %1242 = vmatprep.subr.bf16.mxu0 %v1752_v39  ;;  %v1787_v39 = vld [vmem:[#allocation8 + $0x50] sm:$0xff]  }
 0x31d   :  { %982 = vmatpush1.bf16.msra.mxu1 %v1725_v40  ;;  %v1750_v40 = vld [vmem:[#allocation7 + $0x50] ss:$8 sps:$4 sm:$0xff]  }
 0x31e   :  { %983 = vmatprep.subr.bf16.mxu1 %v1726_v41  ;;  %1243 = vmatpush1.bf16.msra.mxu0 %v1750_v40  ;;  %v1755_v41 = vld [vmem:[#allocation7 + $0x64] ss:$8 sps:$4 sm:$0xff]   ;;  %v1788_v40 = vld [vmem:[#allocation8 + $0x10] sm:$0xff]  }
 0x31f   :  { %1244 = vmatprep.subr.bf16.mxu0 %v1755_v41  ;;  %v1789_v41 = vld [vmem:[#allocation8 + $0x58] sm:$0xff]  }
 0x321   :  { %984 = vmatpush1.bf16.msra.mxu1 %v1728_v42  ;;  %v1753_v42 = vld [vmem:[#allocation7 + $0x60] ss:$8 sps:$4 sm:$0xff]  }
 0x322   :  { %985 = vmatprep.subr.bf16.mxu1 %v1729_v6  ;;  %1245 = vmatpush1.bf16.msra.mxu0 %v1753_v42  ;;  %v1758_v6 = vld [vmem:[#allocation7 + $0x74] ss:$8 sps:$4 sm:$0xff]  }
 0x323   :  { %1246 = vmatprep.subr.bf16.mxu0 %v1758_v6  ;;  %v1790_v42 = vld [vmem:[#allocation8 + $0x18] sm:$0xff]   ;;  %v1791_v6 = vld [vmem:[#allocation8 + $0x60] sm:$0xff]  }
 0x325   :  { %986 = vmatpush1.bf16.msra.mxu1 %v1731_v43  ;;  %v1756_v43 = vld [vmem:[#allocation7 + $0x70] ss:$8 sps:$4 sm:$0xff]  }
 0x326   :  { %987 = vmatprep.subr.bf16.mxu1 %v1732_v44  ;;  %1247 = vmatpush1.bf16.msra.mxu0 %v1756_v43  ;;  %v1761_v44 = vld [vmem:[#allocation7 + $0x84] ss:$8 sps:$4 sm:$0xff]  }
 0x327   :  { %1248 = vmatprep.subr.bf16.mxu0 %v1761_v44  ;;  %v1792_v43 = vld [vmem:[#allocation8 + $0x20] sm:$0xff]   ;;  %v1793_v44 = vld [vmem:[#allocation8 + $0x68] sm:$0xff]  }
 0x329   :  { %988 = vmatpush1.bf16.msra.mxu1 %v1734_v45  ;;  %v1759_v45 = vld [vmem:[#allocation7 + $0x80] ss:$8 sps:$4 sm:$0xff]  }
 0x32a   :  { %1249 = vmatpush1.bf16.msra.mxu0 %v1759_v45  ;;  %v1794_v45 = vld [vmem:[#allocation8 + $0x28] sm:$0xff]  }
 0x32b   :  { %1250 = vmatprep.subr.bf16.mxu0 %v1764_v46  ;;  %v1795_v46 = vld [vmem:[#allocation8 + $0x70] sm:$0xff]  }
 0x32e   :  { %1251 = vmatpush1.bf16.msra.mxu0 %v1762_v47  ;;  %v1796_v47 = vld [vmem:[#allocation8 + $0x30] sm:$0xff]  }
 0x32f   :  { %1252 = vmatprep.subr.bf16.mxu0 %v1767_v3  ;;  %v1797_v3 = vld [vmem:[#allocation8 + $0x78] sm:$0xff]  }
 0x332   :  { %1253 = vmatpush1.bf16.msra.mxu0 %v1765_v48  ;;  %v1798_v48 = vld [vmem:[#allocation8 + $0x38] sm:$0xff]  }
 0x333   :  { %1254 = vmatprep.subr.bf16.mxu0 %v1770_v50 }
 0x336   :  { %1255 = vmatpush1.bf16.msra.mxu0 %v1768_v49  ;;  %v1060_v49 = vld [vmem:[%s2245_s14] sm:$0x3] }
 0x337   :  { %1256 = vmatprep.subr.bf16.mxu0 %v1773_v51  ;;  %v1065_v50 = vrot.slane %v1060_v49, %v2191_v61  ;;  %v1069_v51 = vrot.slane %v1060_v49, %v2196_v63 }
 0x33a   :  { %1257 = vmatpush1.bf16.msra.mxu0 %v1771_v52 }
 0x33b   :  { %1258 = vmatprep.subr.bf16.mxu0 %v1776_v53 }
 0x33e   :  { %1259 = vmatpush1.bf16.msra.mxu0 %v1774_v54 }
 0x33f   :  { %1260 = vmatprep.subr.bf16.mxu0 %v1779_v55 }
 0x342   :  { %1261 = vmatpush1.bf16.msra.mxu0 %v1777_v56 }
 0x3d1   :  { %v642_v57 = vpop.f32.mrb[8].mxu0 }
 0x3d2   :  { %v644_v58 = vpop.f32.mrb[9].mxu0 }
 0x3d3   :  { %v646_v59 = vpop.f32.mrb[10].mxu0 }
 0x3d4   :  { %v647_v60 = vpop.f32.mrb[11].mxu0  ;;  %v785_v59 = vld [vmem:[%s2243_s12] sm:$0x3] }
 0x3d5   :  { %v790_v60 = vrot.slane %v785_v59, %v2191_v61  ;;  %v794_v62 = vrot.slane %v785_v59, %v2196_v63 }
 0x3d9   :  { %v702_v2 = vpop.f32.mrb[12].mxu0 }
 0x3da   :  { %v703_v5 = vadd.f32 %v702_v2, %v642_v57  ;;  %v704_v7 = vpop.f32.mrb[13].mxu0  ;;  %v1782_v57 = vld [vmem:[#allocation7 + $0xf4] ss:$8 sps:$4 sm:$0xff]  }
 0x3db   :  { %v705_v8 = vadd.f32 %v704_v7, %v644_v58  ;;  %v706_v9 = vpop.f32.mrb[14].mxu0  ;;  %v1780_v58 = vld [vmem:[#allocation7 + $0xf0] ss:$8 sps:$4 sm:$0xff]   ;;  %1262 = vmatprep.subr.bf16.mxu0 %v1782_v57 }
 0x3dc   :  { %v721_v10 = vadd.f32 %v714_v1, %v703_v5  ;;  %v707_v12 = vpop.f32.mrb[15].mxu0  ;;  %1263 = vmatpush1.bf16.msra.mxu0 %v1780_v58 }
 0x3dd   :  { %v722_v13 = vadd.f32 %v718_v4, %v705_v8 }
 0x3de   :  { %v723_v14 = vpack.c.bf16 %v721_v10, %v721_v10 }
 0x3df   :  { %v724_v15 = vpack.c.bf16 %v722_v13, %v722_v13 }
 0x3e0   :  { %v725_v17 = vmin.bf16 %v1967_v16, %v723_v14  ;;  %vm745_vm8 = vcmp.gt.bf16.partialorder %v723_v14, 1101021600 }
 0x3e1   :  { %v726_v18 = vmin.bf16 %v1967_v16, %v724_v15  ;;  %vm746_vm7 = vcmp.gt.bf16.partialorder %v724_v15, 1101021600 }
 0x3e2   :  { %v728_v19 = vmul.bf16 1069105081, %v725_v17 }
 0x3e3   :  { %v731_v20 = vmul.bf16 1069105081, %v726_v18 }
 0x3e4   :  { %1807 = vpow.bf16 %v728_v19 }
 0x3e5   :  { %1809 = vpow.bf16 %v731_v20 }
 0x3ef   :  { %v1808_v21 = vpop.eup %1807 }
 0x3f0   :  { %v1810_v22 = vpop.eup %1809  ;;  %v733_v23 = vadd.bf16 1073758208, %v1808_v21 }
 0x3f1   :  { %v734_v24 = vadd.bf16 1073758208, %v1810_v22 }
 0x3f2   :  { %v735_v25 = vmul.bf16 %v1808_v21, %v733_v23 }
 0x3f3   :  { %v736_v26 = vmul.bf16 %v1810_v22, %v734_v24 }
 0x3f4   :  { %v737_v0 = vadd.bf16 1073758208, %v735_v25  ;;  %v747_v33 = vmul.bf16 %v735_v25, %v723_v14 }
 0x3f5   :  { %v738_v27 = vadd.bf16 1073758208, %v736_v26  ;;  %v748_v11 = vmul.bf16 %v736_v26, %v724_v15 }
 0x3f6   :  { %v739_v28 = vunpack.c.l.bf16 %v737_v0 }
 0x3f7   :  { %v740_v29 = vunpack.c.l.bf16 %v738_v27 }
 0x3f8   :  { %1811 = vrcp.f32 %v739_v28 }
 0x3f9   :  { %1813 = vrcp.f32 %v740_v29 }
 0x402   :  { %v1812_v30 = vpop.eup %1811 }
 0x403   :  { %v1814_v31 = vpop.eup %1813  ;;  %v743_v32 = vpack.c.bf16 %v1812_v30, %v1812_v30 }
 0x404   :  { %v744_v34 = vpack.c.bf16 %v1814_v31, %v1814_v31 }
 0x405   :  { %v749_v35 = vmul.bf16 %v747_v33, %v743_v32 }
 0x406   :  { %v750_v36 = vmul.bf16 %v748_v11, %v744_v34 }
 0x407   :  { %v751_v38 = vsel %vm745_vm8, %v723_v14, %v749_v35  ;;  %v1783_v35 = vld [vmem:[#allocation8 + $0x40] sm:$0xff]  }
 0x408   :  { %v752_v37 = vsel %vm746_vm7, %v724_v15, %v750_v36  ;;  %v1784_v36 = vld [vmem:[#allocation8] sm:$0xff]   ;;  %1607 = vmatprep.subr.bf16.mxu1 %v1783_v35 }
 0x409   :  { %989 = vmatprep.mubr.bf16.mxu1 %v752_v37  ;;  %v1785_v37 = vld [vmem:[#allocation8 + $0x48] sm:$0xff]  }
 0x40a   :  { %990 = vmatmul.mubr.bf16.vlgmr.msra.gmra.mrb[0].mxu1 %v751_v38  ;;  %v1786_v38 = vld [vmem:[#allocation8 + $0x8] sm:$0xff]  }
 0x40b   :  { %1608 = vmatpush3.bf16.msra.mxu1 %v1784_v36 }
 0x40c   :  { %1609 = vmatprep.subr.bf16.mxu1 %v1785_v37 }
 0x40f   :  { %1610 = vmatpush3.bf16.msra.mxu1 %v1786_v38 }
 0x410   :  { %1611 = vmatprep.subr.bf16.mxu1 %v1787_v39 }
 0x413   :  { %1612 = vmatpush3.bf16.msra.mxu1 %v1788_v40 }
 0x414   :  { %1613 = vmatprep.subr.bf16.mxu1 %v1789_v41 }
 0x417   :  { %1614 = vmatpush3.bf16.msra.mxu1 %v1790_v42 }
 0x418   :  { %1615 = vmatprep.subr.bf16.mxu1 %v1791_v6 }
 0x41b   :  { %1616 = vmatpush3.bf16.msra.mxu1 %v1792_v43 }
 0x41c   :  { %1617 = vmatprep.subr.bf16.mxu1 %v1793_v44 }
 0x41f   :  { %1618 = vmatpush3.bf16.msra.mxu1 %v1794_v45 }
 0x420   :  { %1619 = vmatprep.subr.bf16.mxu1 %v1795_v46 }
 0x423   :  { %1620 = vmatpush3.bf16.msra.mxu1 %v1796_v47 }
 0x424   :  { %1621 = vmatprep.subr.bf16.mxu1 %v1797_v3 }
 0x427   :  { %1622 = vmatpush3.bf16.msra.mxu1 %v1798_v48 }
 0x4dd   :  { %v991_v1 = vpop.f32.mrb[0].mxu1 }
 0x4de   :  { %v992_v2 = vadd.f32 %v991_v1, %v790_v60  ;;  %v993_v4 = vpop.f32.mrb[1].mxu1 }
 0x4df   :  { %v994_v5 = vadd.f32 %v993_v4, %v794_v62  ;;  %v995_v7 = vpop.f32.mrb[2].mxu1 }
 0x4e0   :  { %v998_v8 = vpack.c.bf16 %v992_v2, %v992_v2  ;;  %v996_v9 = vpop.f32.mrb[3].mxu1 }
 0x4e1   :  { %v999_v10 = vpack.c.bf16 %v994_v5, %v994_v5 }
 0x4e2   :  { %v1000_v12 = vmin.bf16 %v1967_v16, %v998_v8  ;;  %vm1020_vm10 = vcmp.gt.bf16.partialorder %v998_v8, 1101021600 }
 0x4e3   :  { %v1001_v13 = vmin.bf16 %v1967_v16, %v999_v10  ;;  %vm1021_vm9 = vcmp.gt.bf16.partialorder %v999_v10, 1101021600 }
 0x4e4   :  { %v1003_v14 = vmul.bf16 1069105081, %v1000_v12 }
 0x4e5   :  { %v1006_v15 = vmul.bf16 1069105081, %v1001_v13 }
 0x4e6   :  { %1815 = vpow.bf16 %v1003_v14 }
 0x4e7   :  { %1817 = vpow.bf16 %v1006_v15 }
 0x4f1   :  { %v1816_v17 = vpop.eup %1815 }
 0x4f2   :  { %v1818_v18 = vpop.eup %1817  ;;  %v1008_v19 = vadd.bf16 1073758208, %v1816_v17 }
 0x4f3   :  { %v1009_v20 = vadd.bf16 1073758208, %v1818_v18 }
 0x4f4   :  { %v1010_v21 = vmul.bf16 %v1816_v17, %v1008_v19 }
 0x4f5   :  { %v1011_v22 = vmul.bf16 %v1818_v18, %v1009_v20 }
 0x4f6   :  { %v1012_v23 = vadd.bf16 1073758208, %v1010_v21  ;;  %v1022_v28 = vmul.bf16 %v1010_v21, %v998_v8 }
 0x4f7   :  { %v1013_v24 = vadd.bf16 1073758208, %v1011_v22  ;;  %v1023_v31 = vmul.bf16 %v1011_v22, %v999_v10 }
 0x4f8   :  { %v1014_v25 = vunpack.c.l.bf16 %v1012_v23 }
 0x4f9   :  { %v1015_v26 = vunpack.c.l.bf16 %v1013_v24 }
 0x4fa   :  { %1819 = vrcp.f32 %v1014_v25  ;;  %v1581_v25 = vld [vmem:[%s2247_s16] ss:$0 sm:$0xff] }
 0x4fb   :  { %1821 = vrcp.f32 %v1015_v26 }
 0x504   :  { %v1820_v0 = vpop.eup %1819 }
 0x505   :  { %v1822_v27 = vpop.eup %1821  ;;  %v1018_v29 = vpack.c.bf16 %v1820_v0, %v1820_v0 }
 0x506   :  { %v1019_v30 = vpack.c.bf16 %v1822_v27, %v1822_v27 }
 0x507   :  { %v1024_v32 = vmul.bf16 %v1022_v28, %v1018_v29 }
 0x508   :  { %v1025_v33 = vmul.bf16 %v1023_v31, %v1019_v30 }
 0x509   :  { %v1026_v11 = vsel %vm1020_vm10, %v998_v8, %v1024_v32 }
 0x50a   :  { %v1027_v34 = vsel %vm1021_vm9, %v999_v10, %v1025_v33 }
 0x50b   :  { %1264 = vmatprep.mubr.bf16.mxu0 %v1027_v34 }
 0x50c   :  { %1265 = vmatmul.mubr.bf16.vlgmr.msra.gmra.mrb[16].mxu0 %v1026_v11 }
 0x5df   :  { %v1266_v52 = vpop.f32.mrb[16].mxu0 }
 0x5e0   :  { %v1267_v53 = vadd.f32 %v1266_v52, %v1065_v50  ;;  %v1268_v54 = vpop.f32.mrb[17].mxu0 }
 0x5e1   :  { %v1269_v55 = vadd.f32 %v1268_v54, %v1069_v51  ;;  %v1270_v56 = vpop.f32.mrb[18].mxu0 }
 0x5e2   :  { %v1273_v57 = vpack.c.bf16 %v1267_v53, %v1267_v53  ;;  %v1271_v58 = vpop.f32.mrb[19].mxu0 }
 0x5e3   :  { %v1274_v59 = vpack.c.bf16 %v1269_v55, %v1269_v55 }
 0x5e4   :  { %v1275_v60 = vmin.bf16 %v1967_v16, %v1273_v57  ;;  %vm1295_vm12 = vcmp.gt.bf16.partialorder %v1273_v57, 1101021600 }
 0x5e5   :  { %v1276_v62 = vmin.bf16 %v1967_v16, %v1274_v59  ;;  %vm1296_vm11 = vcmp.gt.bf16.partialorder %v1274_v59, 1101021600 }
 0x5e6   :  { %v1278_v1 = vmul.bf16 1069105081, %v1275_v60 }
 0x5e7   :  { %v1281_v2 = vmul.bf16 1069105081, %v1276_v62 }
 0x5e8   :  { %1823 = vpow.bf16 %v1278_v1 }
 0x5e9   :  { %1825 = vpow.bf16 %v1281_v2 }
 0x5f3   :  { %v1824_v4 = vpop.eup %1823 }
 0x5f4   :  { %v1826_v61 = vpop.eup %1825  ;;  %v1283_v5 = vadd.bf16 1073758208, %v1824_v4 }
 0x5f5   :  { %v1284_v63 = vadd.bf16 1073758208, %v1826_v61 }
 0x5f6   :  { %v1285_v7 = vmul.bf16 %v1824_v4, %v1283_v5 }
 0x5f7   :  { %v1286_v8 = vmul.bf16 %v1826_v61, %v1284_v63 }
 0x5f8   :  { %v1287_v9 = vadd.bf16 1073758208, %v1285_v7  ;;  %v1297_v17 = vmul.bf16 %v1285_v7, %v1273_v57 }
 0x5f9   :  { %v1288_v10 = vadd.bf16 1073758208, %v1286_v8  ;;  %v1298_v19 = vmul.bf16 %v1286_v8, %v1274_v59 }
 0x5fa   :  { %v1289_v12 = vunpack.c.l.bf16 %v1287_v9 }
 0x5fb   :  { %v1290_v13 = vunpack.c.l.bf16 %v1288_v10 }
 0x5fc   :  { %1827 = vrcp.f32 %v1289_v12 }
 0x5fd   :  { %1829 = vrcp.f32 %v1290_v13 }
 0x606   :  { %v1828_v14 = vpop.eup %1827 }
 0x607   :  { %v1830_v15 = vpop.eup %1829  ;;  %v1293_v16 = vpack.c.bf16 %v1828_v14, %v1828_v14 }
 0x608   :  { %v1294_v18 = vpack.c.bf16 %v1830_v15, %v1830_v15 }
 0x609   :  { %v1299_v20 = vmul.bf16 %v1297_v17, %v1293_v16 }
 0x60a   :  { %v1300_v21 = vmul.bf16 %v1298_v19, %v1294_v18 }
 0x60b   :  { %v1301_v23 = vsel %vm1295_vm12, %v1273_v57, %v1299_v20 }
 0x60c   :  { %v1302_v22 = vsel %vm1296_vm11, %v1274_v59, %v1300_v21 }
 0x60d   :  { %1470 = vmatprep.mubr.bf16.mxu1 %v1302_v22 }
 0x60e   :  { %1471 = vmatmul.mubr.bf16.vlgmr.msra.gmra.mrb[4].mxu1 %v1301_v23 }
 0x6e1   :  { %v1623_v24 = vpop.f32.mrb[4].mxu1 }
 0x6e2   :  { %v1624_v26 = vpop.f32.mrb[5].mxu1 }
 0x6e3   :  { %v1625_v0 = vadd.f32 %v1624_v26, %v1623_v24  ;;  %v1626_v27 = vpop.f32.mrb[6].mxu1 }
 0x6e4   :  { %v1627_v28 = vpop.f32.mrb[7].mxu1 }
 0x6e5   :  { %v1473_v29 = vadd.f32 %v1625_v0, %v1581_v25 }
 0x6e7   :  { %1478 = vst [vmem:[#allocation10] sm:$0xff] %v1473_v29 }
 0x6e8   :  { %1930 = shalt.err (!%p1927_p8)
}
 0x6e9   :  { %s2255_s22 = sld [smem:[#allocation17_spill]] }
 0x6ef   :  { %s1931_s16 = scalar_lea.hbm %s2255_s22, 128 }
 0x6f0   :  { %p1932_p9 = scmp.ne.s32.totalorder %s2255_s22, %s1931_s16  ;;  %p1935_p10 = scmp.lt.u32.totalorder %s1931_s16, %s2255_s22 }
 0x6f2   :  { %p1937_p11 = pnand %p1935_p10, %p1932_p9 }
 0x6f4   :  { %1940 = shalt.err (!%p1937_p11)
}
 0x6f5   :  { %1488 = dma.vmem_to_hbm [thread:$0]  %s1486_s11, 128, %s2255_s22, [#allocation4]  }
 0x6f6   :  { %1947 = dma.done.wait [#allocation4], 128  }
 0x6f7   :  { %1948 = vsyncadd [#allocation4], 4294967168 }
 0x6f8   :  { %1492 = vsyncpa [#allocation3], 1 }
 0x6f9   :  { %1493 = vsyncpa [#allocation6], 1 }
 0x6fa   :  { %1494 = vsyncpa [#allocation9], 1 }
 0x6fb   :  { %1495 = vsyncpa [#allocation4], 1 }

</bundles_post_ra>
